<compile_context>
chip_gen: v7x
topology: tpu7x:2x2x1
jax: 0.10.0
libtpu: 0.0.40
codegen_flags: <defaults>
</compile_context>

<pallas_src>
import jax
import jax.numpy as jnp
import numpy as np
from jax.experimental import pallas as pl
from jax.experimental.pallas import tpu as pltpu

# ----------------------------- configuration --------------------------------
B = 2               # batch
IN_CHANNELS = 4     # in_channels (== out_channels: residual x_org + proj(x))
OUT_CHANNELS = 4
HIDDEN = 32         # hidden_channels
KERNEL_SIZE = 3
N_LAYERS = 3
T = 16              # sequence length (multiple of 8 -> tile-aligned reshapes)
EPS = 1e-4          # LayerNorm eps (matches the torch module default)
P_DROPOUT = 0.0     # dropout is identity at inference / p_dropout=0

# f32 by default (tight correctness check, safe on v5e); set to jnp.bfloat16 on
# v6e/v7x if the accuracy budget allows -- MXU accumulation stays f32 and the
# test tolerances in __main__ adapt automatically.
MXU_DTYPE = jnp.float32


# ------------------------------- kernel -------------------------------------
def conv_relu_norm_kernel(x_ref, mask_ref, w_ref, v_ref, o_ref):
    # x_ref   : (B, C, T)      mask_ref: (B, 1, T)
    # w_ref   : (NL+1, K*H, H) slot 0 rows [0:K*C]   = layer-0 conv weight
    #                          slots 1..NL-1         = hidden conv weights
    #                          slot NL rows[:H]cols[:C] = 1x1 proj weight
    # v_ref   : (3*NL+1, H)    rows [0:NL) conv biases, [NL:2NL) gamma,
    #                          [2NL:3NL) beta, row 3NL[:C] = proj bias
    b, c, t = x_ref.shape
    hid = w_ref.shape[-1]
    nl = w_ref.shape[0] - 1
    kk = w_ref.shape[1] // hid
    pad = kk // 2
    bt = b * t

    # ---- NCL -> flat (B*T, channels): one in-VMEM transpose per tensor ------
    x_flat = jnp.transpose(x_ref[...], (0, 2, 1)).reshape(bt, c)
    # mask broadcast hoisted out of the layer loop (JAX does not CSE it);
    # broadcast BEFORE the transpose so the transpose has no degenerate dims.
    mask_h = jnp.transpose(jnp.broadcast_to(mask_ref[...], (b, hid, t)),
                           (0, 2, 1)).reshape(bt, hid)
    mask_c = mask_h[:, :c]

    # Per-element LOCAL time index: rolls over the flat (B*T) axis must not
    # wrap across batch elements, so tap validity is expressed in local time.
    tloc = jax.lax.broadcasted_iota(jnp.int32, (bt, 1), 0) % t
    # Only the non-trivial half of each compare is emitted, once, outside the loop.
    valid = {off: (tloc < t - off) if off > 0 else (tloc >= -off)
             for off in range(-pad, pad + 1) if off != 0}

    def tap(h, off):
        """out[n] = h[n + off] within each batch element, zero outside [0, T)."""
        if off == 0:
            return h
        rolled = pltpu.roll(h, shift=(-off) % bt, axis=0)   # XLU sublane rotate
        return jnp.where(valid[off], rolled, 0.0)

    def mm(a, w):
        return jnp.dot(a.astype(MXU_DTYPE), w.astype(MXU_DTYPE),
                       preferred_element_type=jnp.float32)

    inv_h = 1.0 / hid
    h = x_flat
    for i in range(nl):
        cin = c if i == 0 else hid
        hm = h * (mask_c if i == 0 else mask_h)              # conv input x*x_mask
        # Fold all K taps into one wide operand -> ONE MXU matmul per layer.
        # (Alternative: K accumulated matmuls, trading the concat's XLU lane
        #  placement for extra MXU issues -- bundle-dump both to decide.)
        wide = jnp.concatenate([tap(hm, k - pad) for k in range(kk)], axis=1)
        h = mm(wide, w_ref[i][:kk * cin, :]) + v_ref[i:i + 1, :]     # (B*T, H)

        # LayerNorm over channels: two INDEPENDENT lane reductions (overlap in
        # the XLU slots); var = E[x^2] - mean^2, clamped at zero.
        s1 = jnp.sum(h, axis=-1, keepdims=True)
        s2 = jnp.sum(h * h, axis=-1, keepdims=True)
        mean = s1 * inv_h
        var = jnp.maximum(s2 * inv_h - mean * mean, 0.0)
        h = (h - mean) * jax.lax.rsqrt(var + EPS)
        h = h * v_ref[nl + i:nl + i + 1, :] + v_ref[2 * nl + i:2 * nl + i + 1, :]

        # ReLU.  TODO(synk): nn.Dropout(p_dropout) omitted -- identity at
        # inference / p_dropout == 0.
        h = jnp.maximum(h, 0.0)

    # residual + 1x1 proj + final mask; back to NCL, single whole-tile store.
    w_p = w_ref[nl][:hid, :c]
    b_p = v_ref[3 * nl:3 * nl + 1, :c]
    out = (x_flat + mm(h, w_p) + b_p) * mask_c
    o_ref[...] = jnp.transpose(out.reshape(b, t, c), (0, 2, 1)).astype(o_ref.dtype)


def conv_relu_norm_pallas(x_bct, mask_b1t, w_pack, v_pack):
    """ConvReluNorm forward.  PyTorch NCL I/O: x (B, C, T), x_mask (B, 1, T)."""
    vmem = pl.BlockSpec(memory_space=pltpu.MemorySpace.VMEM)
    return pl.pallas_call(
        conv_relu_norm_kernel,
        out_shape=jax.ShapeDtypeStruct(x_bct.shape, x_bct.dtype),
        # No grid: single invocation, whole arrays resident in VMEM (B folded
        # into the matmul M dimension).  At production T, add a T grid axis
        # ('arbitrary') with a (K-1) halo instead.
        in_specs=[vmem, vmem, vmem, vmem],
        out_specs=vmem,
    )(x_bct, mask_b1t, w_pack, v_pack)


# --------------------------- pure-JAX reference ------------------------------
def _shift_ref(h, off):
    """out[:, t] = h[:, t + off] with zero padding (axis=1 is time)."""
    if off == 0:
        return h
    if off > 0:
        return jnp.concatenate(
            [h[:, off:, :], jnp.zeros_like(h[:, :off, :])], axis=1)
    return jnp.concatenate(
        [jnp.zeros_like(h[:, off:, :]), h[:, :off, :]], axis=1)


def reference_forward(x_bct, mask_b1t, p):
    x = jnp.transpose(x_bct, (0, 2, 1))            # (B, T, C)
    mask = jnp.transpose(mask_b1t, (0, 2, 1))      # (B, T, 1)
    x_org = x
    pad = KERNEL_SIZE // 2
    h = x
    for i in range(N_LAYERS):
        hm = h * mask
        wide = jnp.concatenate(
            [_shift_ref(hm, k - pad) for k in range(KERNEL_SIZE)], axis=-1)
        if i == 0:
            h = wide @ p['w0'] + p['b0']
        else:
            h = wide @ p['wl'][i - 1] + p['bl'][i - 1]
        mean = jnp.mean(h, axis=-1, keepdims=True)                 # two-pass LN,
        var = jnp.mean((h - mean) ** 2, axis=-1, keepdims=True)    # as in torch
        h = (h - mean) * jax.lax.rsqrt(var + EPS)
        h = h * p['gamma'][i] + p['beta'][i]
        h = jnp.maximum(h, 0.0)
    out = (x_org + h @ p['w_proj'] + p['b_proj']) * mask
    return jnp.transpose(out, (0, 2, 1))


# ------------------------------ parameters -----------------------------------
def init_params(key):
    ks = jax.random.split(key, 8)
    cin, cout, hid, kk, nl = IN_CHANNELS, OUT_CHANNELS, HIDDEN, KERNEL_SIZE, N_LAYERS
    # Conv1d weights stored in the kernel-friendly wide layout:
    # row index = k * Cin + i  (tap-major, then input channel).
    return {
        'w0': 0.1 * jax.random.normal(ks[0], (kk * cin, hid), jnp.float32),
        'b0': 0.1 * jax.random.normal(ks[1], (1, hid), jnp.float32),
        'wl': 0.1 * jax.random.normal(ks[2], (nl - 1, kk * hid, hid), jnp.float32),
        'bl': 0.1 * jax.random.normal(ks[3], (nl - 1, 1, hid), jnp.float32),
        'gamma': 1.0 + 0.1 * jax.random.normal(ks[4], (nl, 1, hid), jnp.float32),
        'beta': 0.1 * jax.random.normal(ks[5], (nl, 1, hid), jnp.float32),
        # NOTE: the torch module zero-inits `proj`; non-zero values are used so
        # the projection + residual path is actually exercised.
        'w_proj': 0.1 * jax.random.normal(ks[6], (hid, cout), jnp.float32),
        'b_proj': 0.1 * jax.random.normal(ks[7], (1, cout), jnp.float32),
    }


def pack_params(p):
    """One-time (weight-load-time) packing into two flat arrays -> 2 DMAs."""
    nl, kk, hid = N_LAYERS, KERNEL_SIZE, HIDDEN
    w_pack = np.zeros((nl + 1, kk * hid, hid), np.float32)
    w_pack[0, :kk * IN_CHANNELS, :] = np.asarray(p['w0'])
    for i in range(1, nl):
        w_pack[i] = np.asarray(p['wl'][i - 1])
    w_pack[nl, :hid, :OUT_CHANNELS] = np.asarray(p['w_proj'])

    v_pack = np.zeros((3 * nl + 1, hid), np.float32)
    v_pack[0] = np.asarray(p['b0'][0])
    for i in range(1, nl):
        v_pack[i] = np.asarray(p['bl'][i - 1, 0])
    v_pack[nl:2 * nl] = np.asarray(p['gamma'][:, 0, :])
    v_pack[2 * nl:3 * nl] = np.asarray(p['beta'][:, 0, :])
    v_pack[3 * nl, :OUT_CHANNELS] = np.asarray(p['b_proj'][0])
    return jnp.asarray(w_pack), jnp.asarray(v_pack)


# --------------------------------- main --------------------------------------
if __name__ == "__main__":
    key = jax.random.PRNGKey(0)
    key, kx = jax.random.split(key)

    params = init_params(key)
    w_pack, v_pack = pack_params(params)

    # PyTorch layout: x (B, C, T), x_mask (B, 1, T)
    x = jax.random.normal(kx, (B, IN_CHANNELS, T), jnp.float32)
    lengths = jnp.array([T, 12])
    x_mask = (jnp.arange(T)[None, :] < lengths[:, None]).astype(
        jnp.float32)[:, None, :]

    y = jax.block_until_ready(conv_relu_norm_pallas(x, x_mask, w_pack, v_pack))
    y_ref = jax.block_until_ready(reference_forward(x, x_mask, params))

    if MXU_DTYPE == jnp.float32:
        rtol, atol = 1e-4, 1e-5
    else:  # bf16 MXU operands
        rtol, atol = 2e-2, 2e-2
    np.testing.assert_allclose(np.asarray(y), np.asarray(y_ref),
                               rtol=rtol, atol=atol)
    assert y.shape == (B, OUT_CHANNELS, T)
    print("KERNEL_OK")
</pallas_src>

<mosaic_0001>
module attributes {stable_mosaic.version = 11 : i64} {
  func.func @conv_relu_norm_kernel(%arg0: memref<2x4x16xf32, #tpu.memory_space<vmem>>, %arg1: memref<2x1x16xf32, #tpu.memory_space<vmem>>, %arg2: memref<4x96x32xf32, #tpu.memory_space<vmem>>, %arg3: memref<10x32xf32, #tpu.memory_space<vmem>>, %arg4: memref<2x4x16xf32, #tpu.memory_space<vmem>>) attributes {dimension_semantics = [], scalar_prefetch = 0 : i64, scratch_operands = 0 : i64, tpu.core_type = #tpu.core_type<tc>} {
    %c0 = arith.constant 0 : index
    %c0_0 = arith.constant 0 : index
    %c0_1 = arith.constant 0 : index
    %0 = vector.load %arg0[%c0, %c0_0, %c0_1] : memref<2x4x16xf32, #tpu.memory_space<vmem>>, vector<2x4x16xf32>
    %1 = tpu.transpose %0, [0, 2, 1] : vector<2x4x16xf32> -> vector<2x16x4xf32>
    %2 = vector.shape_cast %1 : vector<2x16x4xf32> to vector<32x4xf32>
    %c0_2 = arith.constant 0 : index
    %c0_3 = arith.constant 0 : index
    %c0_4 = arith.constant 0 : index
    %3 = vector.load %arg1[%c0_2, %c0_3, %c0_4] : memref<2x1x16xf32, #tpu.memory_space<vmem>>, vector<2x1x16xf32>
    %4 = vector.shape_cast %3 : vector<2x1x16xf32> to vector<2x1x16xf32>
    %5 = vector.broadcast %4 : vector<2x1x16xf32> to vector<2x32x16xf32>
    %6 = tpu.transpose %5, [0, 2, 1] : vector<2x32x16xf32> -> vector<2x16x32xf32>
    %7 = vector.shape_cast %6 : vector<2x16x32xf32> to vector<32x32xf32>
    %8 = vector.extract_strided_slice %7 {offsets = [0, 0], sizes = [32, 4], strides = [1, 1]} : vector<32x32xf32> to vector<32x4xf32>
    %9 = tpu.iota {dimensions = array<i32: 0>} : vector<32x1xi32>
    %c16_i32 = arith.constant 16 : i32
    %c0_i32 = arith.constant 0 : i32
    %10 = arith.cmpi eq, %c16_i32, %c0_i32 : i32
    %c1_i32 = arith.constant 1 : i32
    %11 = arith.select %10, %c1_i32, %c16_i32 : i32
    %12 = vector.broadcast %11 : i32 to vector<32x1xi32>
    %13 = arith.remsi %9, %12 : vector<32x1xi32>
    %c0_i32_5 = arith.constant 0 : i32
    %14 = vector.broadcast %c0_i32_5 : i32 to vector<32x1xi32>
    %15 = arith.cmpi ne, %13, %14 : vector<32x1xi32>
    %c0_i32_6 = arith.constant 0 : i32
    %16 = vector.broadcast %c0_i32_6 : i32 to vector<32x1xi32>
    %17 = arith.cmpi slt, %13, %16 : vector<32x1xi32>
    %c0_i32_7 = arith.constant 0 : i32
    %18 = arith.cmpi slt, %11, %c0_i32_7 : i32
    %19 = vector.broadcast %18 : i1 to vector<32x1xi1>
    %20 = vector.broadcast %19 : vector<32x1xi1> to vector<32x1xi1>
    %21 = arith.xori %17, %20 : vector<32x1xi1>
    %22 = arith.andi %21, %15 : vector<32x1xi1>
    %23 = vector.broadcast %11 : i32 to vector<32x1xi32>
    %24 = arith.addi %13, %23 : vector<32x1xi32>
    %25 = arith.select %22, %24, %13 : vector<32x1xi1>, vector<32x1xi32>
    %c1_i32_8 = arith.constant 1 : i32
    %26 = vector.broadcast %c1_i32_8 : i32 to vector<32x1xi32>
    %27 = arith.cmpi sge, %25, %26 : vector<32x1xi32>
    %c15_i32 = arith.constant 15 : i32
    %28 = vector.broadcast %c15_i32 : i32 to vector<32x1xi32>
    %29 = arith.cmpi slt, %25, %28 : vector<32x1xi32>
    %30 = arith.mulf %2, %8 : vector<32x4xf32>
    %c1_i32_9 = arith.constant 1 : i32
    %31 = tpu.dynamic_rotate %30 by %c1_i32_9 dim 0 : vector<32x4xf32>, i32 -> vector<32x4xf32>
    %cst = arith.constant 0.000000e+00 : f32
    %32 = vector.shape_cast %27 : vector<32x1xi1> to vector<32x1xi1>
    %33 = vector.broadcast %32 : vector<32x1xi1> to vector<32x4xi1>
    %34 = vector.broadcast %cst : f32 to vector<32x4xf32>
    %35 = arith.select %33, %31, %34 : vector<32x4xi1>, vector<32x4xf32>
    %c31_i32 = arith.constant 31 : i32
    %36 = tpu.dynamic_rotate %30 by %c31_i32 dim 0 : vector<32x4xf32>, i32 -> vector<32x4xf32>
    %cst_10 = arith.constant 0.000000e+00 : f32
    %37 = vector.shape_cast %29 : vector<32x1xi1> to vector<32x1xi1>
    %38 = vector.broadcast %37 : vector<32x1xi1> to vector<32x4xi1>
    %39 = vector.broadcast %cst_10 : f32 to vector<32x4xf32>
    %40 = arith.select %38, %36, %39 : vector<32x4xi1>, vector<32x4xf32>
    %41 = tpu.concatenate %35, %30, %40 in 1 : vector<32x4xf32>, vector<32x4xf32>, vector<32x4xf32> -> vector<32x12xf32>
    %c0_11 = arith.constant 0 : index
    %c0_12 = arith.constant 0 : index
    %c0_13 = arith.constant 0 : index
    %42 = vector.load %arg2[%c0_11, %c0_12, %c0_13] : memref<4x96x32xf32, #tpu.memory_space<vmem>>, vector<1x96x32xf32>
    %43 = vector.shape_cast %42 : vector<1x96x32xf32> to vector<96x32xf32>
    %44 = vector.extract_strided_slice %43 {offsets = [0, 0], sizes = [12, 32], strides = [1, 1]} : vector<96x32xf32> to vector<12x32xf32>
    %cst_14 = arith.constant dense<0.000000e+00> : vector<32x32xf32>
    %45 = tpu.matmul %41, %44, %cst_14 {dimension_numbers = #tpu.dot_dimension_numbers<[1], [0], [0], [1], [0, 0, 1, 1], [], []>} : vector<32x12xf32>, vector<12x32xf32>, vector<32x32xf32> -> vector<32x32xf32>
    %c0_15 = arith.constant 0 : index
    %c0_16 = arith.constant 0 : index
    %46 = vector.load %arg3[%c0_15, %c0_16] : memref<10x32xf32, #tpu.memory_space<vmem>>, vector<1x32xf32>
    %47 = vector.broadcast %46 : vector<1x32xf32> to vector<32x32xf32>
    %48 = arith.addf %45, %47 : vector<32x32xf32>
    %cst_17 = arith.constant dense<0.000000e+00> : vector<32xf32>
    %49 = vector.multi_reduction <add>, %48, %cst_17 [1] : vector<32x32xf32> to vector<32xf32>
    %50 = vector.shape_cast %49 : vector<32xf32> to vector<32x1xf32>
    %51 = arith.mulf %48, %48 : vector<32x32xf32>
    %cst_18 = arith.constant dense<0.000000e+00> : vector<32xf32>
    %52 = vector.multi_reduction <add>, %51, %cst_18 [1] : vector<32x32xf32> to vector<32xf32>
    %53 = vector.shape_cast %52 : vector<32xf32> to vector<32x1xf32>
    %cst_19 = arith.constant 3.125000e-02 : f32
    %54 = vector.broadcast %cst_19 : f32 to vector<32x1xf32>
    %55 = arith.mulf %50, %54 : vector<32x1xf32>
    %cst_20 = arith.constant 3.125000e-02 : f32
    %56 = vector.broadcast %cst_20 : f32 to vector<32x1xf32>
    %57 = arith.mulf %53, %56 : vector<32x1xf32>
    %58 = arith.mulf %55, %55 : vector<32x1xf32>
    %59 = arith.subf %57, %58 : vector<32x1xf32>
    %cst_21 = arith.constant 0.000000e+00 : f32
    %60 = vector.broadcast %cst_21 : f32 to vector<32x1xf32>
    %61 = arith.maximumf %59, %60 : vector<32x1xf32>
    %62 = vector.broadcast %55 : vector<32x1xf32> to vector<32x32xf32>
    %63 = arith.subf %48, %62 : vector<32x32xf32>
    %cst_22 = arith.constant 9.99999974E-5 : f32
    %64 = vector.broadcast %cst_22 : f32 to vector<32x1xf32>
    %65 = arith.addf %61, %64 : vector<32x1xf32>
    %66 = math.rsqrt %65 : vector<32x1xf32>
    %67 = vector.broadcast %66 : vector<32x1xf32> to vector<32x32xf32>
    %68 = arith.mulf %63, %67 : vector<32x32xf32>
    %c3 = arith.constant 3 : index
    %c0_23 = arith.constant 0 : index
    %69 = vector.load %arg3[%c3, %c0_23] : memref<10x32xf32, #tpu.memory_space<vmem>>, vector<1x32xf32>
    %70 = vector.broadcast %69 : vector<1x32xf32> to vector<32x32xf32>
    %71 = arith.mulf %68, %70 : vector<32x32xf32>
    %c6 = arith.constant 6 : index
    %c0_24 = arith.constant 0 : index
    %72 = vector.load %arg3[%c6, %c0_24] : memref<10x32xf32, #tpu.memory_space<vmem>>, vector<1x32xf32>
    %73 = vector.broadcast %72 : vector<1x32xf32> to vector<32x32xf32>
    %74 = arith.addf %71, %73 : vector<32x32xf32>
    %cst_25 = arith.constant 0.000000e+00 : f32
    %75 = vector.broadcast %cst_25 : f32 to vector<32x32xf32>
    %76 = arith.maximumf %74, %75 : vector<32x32xf32>
    %77 = arith.mulf %76, %7 : vector<32x32xf32>
    %c1_i32_26 = arith.constant 1 : i32
    %78 = tpu.dynamic_rotate %77 by %c1_i32_26 dim 0 : vector<32x32xf32>, i32 -> vector<32x32xf32>
    %cst_27 = arith.constant 0.000000e+00 : f32
    %79 = vector.shape_cast %27 : vector<32x1xi1> to vector<32x1xi1>
    %80 = vector.broadcast %79 : vector<32x1xi1> to vector<32x32xi1>
    %81 = vector.broadcast %cst_27 : f32 to vector<32x32xf32>
    %82 = arith.select %80, %78, %81 : vector<32x32xi1>, vector<32x32xf32>
    %c31_i32_28 = arith.constant 31 : i32
    %83 = tpu.dynamic_rotate %77 by %c31_i32_28 dim 0 : vector<32x32xf32>, i32 -> vector<32x32xf32>
    %cst_29 = arith.constant 0.000000e+00 : f32
    %84 = vector.shape_cast %29 : vector<32x1xi1> to vector<32x1xi1>
    %85 = vector.broadcast %84 : vector<32x1xi1> to vector<32x32xi1>
    %86 = vector.broadcast %cst_29 : f32 to vector<32x32xf32>
    %87 = arith.select %85, %83, %86 : vector<32x32xi1>, vector<32x32xf32>
    %88 = tpu.concatenate %82, %77, %87 in 1 : vector<32x32xf32>, vector<32x32xf32>, vector<32x32xf32> -> vector<32x96xf32>
    %c1 = arith.constant 1 : index
    %c0_30 = arith.constant 0 : index
    %c0_31 = arith.constant 0 : index
    %89 = vector.load %arg2[%c1, %c0_30, %c0_31] : memref<4x96x32xf32, #tpu.memory_space<vmem>>, vector<1x96x32xf32>
    %90 = vector.shape_cast %89 : vector<1x96x32xf32> to vector<96x32xf32>
    %cst_32 = arith.constant dense<0.000000e+00> : vector<32x32xf32>
    %91 = tpu.matmul %88, %90, %cst_32 {dimension_numbers = #tpu.dot_dimension_numbers<[1], [0], [0], [1], [0, 0, 1, 1], [], []>} : vector<32x96xf32>, vector<96x32xf32>, vector<32x32xf32> -> vector<32x32xf32>
    %c1_33 = arith.constant 1 : index
    %c0_34 = arith.constant 0 : index
    %92 = vector.load %arg3[%c1_33, %c0_34] : memref<10x32xf32, #tpu.memory_space<vmem>>, vector<1x32xf32>
    %93 = vector.broadcast %92 : vector<1x32xf32> to vector<32x32xf32>
    %94 = arith.addf %91, %93 : vector<32x32xf32>
    %cst_35 = arith.constant dense<0.000000e+00> : vector<32xf32>
    %95 = vector.multi_reduction <add>, %94, %cst_35 [1] : vector<32x32xf32> to vector<32xf32>
    %96 = vector.shape_cast %95 : vector<32xf32> to vector<32x1xf32>
    %97 = arith.mulf %94, %94 : vector<32x32xf32>
    %cst_36 = arith.constant dense<0.000000e+00> : vector<32xf32>
    %98 = vector.multi_reduction <add>, %97, %cst_36 [1] : vector<32x32xf32> to vector<32xf32>
    %99 = vector.shape_cast %98 : vector<32xf32> to vector<32x1xf32>
    %cst_37 = arith.constant 3.125000e-02 : f32
    %100 = vector.broadcast %cst_37 : f32 to vector<32x1xf32>
    %101 = arith.mulf %96, %100 : vector<32x1xf32>
    %cst_38 = arith.constant 3.125000e-02 : f32
    %102 = vector.broadcast %cst_38 : f32 to vector<32x1xf32>
    %103 = arith.mulf %99, %102 : vector<32x1xf32>
    %104 = arith.mulf %101, %101 : vector<32x1xf32>
    %105 = arith.subf %103, %104 : vector<32x1xf32>
    %cst_39 = arith.constant 0.000000e+00 : f32
    %106 = vector.broadcast %cst_39 : f32 to vector<32x1xf32>
    %107 = arith.maximumf %105, %106 : vector<32x1xf32>
    %108 = vector.broadcast %101 : vector<32x1xf32> to vector<32x32xf32>
    %109 = arith.subf %94, %108 : vector<32x32xf32>
    %cst_40 = arith.constant 9.99999974E-5 : f32
    %110 = vector.broadcast %cst_40 : f32 to vector<32x1xf32>
    %111 = arith.addf %107, %110 : vector<32x1xf32>
    %112 = math.rsqrt %111 : vector<32x1xf32>
    %113 = vector.broadcast %112 : vector<32x1xf32> to vector<32x32xf32>
    %114 = arith.mulf %109, %113 : vector<32x32xf32>
    %c4 = arith.constant 4 : index
    %c0_41 = arith.constant 0 : index
    %115 = vector.load %arg3[%c4, %c0_41] : memref<10x32xf32, #tpu.memory_space<vmem>>, vector<1x32xf32>
    %116 = vector.broadcast %115 : vector<1x32xf32> to vector<32x32xf32>
    %117 = arith.mulf %114, %116 : vector<32x32xf32>
    %c7 = arith.constant 7 : index
    %c0_42 = arith.constant 0 : index
    %118 = vector.load %arg3[%c7, %c0_42] : memref<10x32xf32, #tpu.memory_space<vmem>>, vector<1x32xf32>
    %119 = vector.broadcast %118 : vector<1x32xf32> to vector<32x32xf32>
    %120 = arith.addf %117, %119 : vector<32x32xf32>
    %cst_43 = arith.constant 0.000000e+00 : f32
    %121 = vector.broadcast %cst_43 : f32 to vector<32x32xf32>
    %122 = arith.maximumf %120, %121 : vector<32x32xf32>
    %123 = arith.mulf %122, %7 : vector<32x32xf32>
    %c1_i32_44 = arith.constant 1 : i32
    %124 = tpu.dynamic_rotate %123 by %c1_i32_44 dim 0 : vector<32x32xf32>, i32 -> vector<32x32xf32>
    %cst_45 = arith.constant 0.000000e+00 : f32
    %125 = vector.shape_cast %27 : vector<32x1xi1> to vector<32x1xi1>
    %126 = vector.broadcast %125 : vector<32x1xi1> to vector<32x32xi1>
    %127 = vector.broadcast %cst_45 : f32 to vector<32x32xf32>
    %128 = arith.select %126, %124, %127 : vector<32x32xi1>, vector<32x32xf32>
    %c31_i32_46 = arith.constant 31 : i32
    %129 = tpu.dynamic_rotate %123 by %c31_i32_46 dim 0 : vector<32x32xf32>, i32 -> vector<32x32xf32>
    %cst_47 = arith.constant 0.000000e+00 : f32
    %130 = vector.shape_cast %29 : vector<32x1xi1> to vector<32x1xi1>
    %131 = vector.broadcast %130 : vector<32x1xi1> to vector<32x32xi1>
    %132 = vector.broadcast %cst_47 : f32 to vector<32x32xf32>
    %133 = arith.select %131, %129, %132 : vector<32x32xi1>, vector<32x32xf32>
    %134 = tpu.concatenate %128, %123, %133 in 1 : vector<32x32xf32>, vector<32x32xf32>, vector<32x32xf32> -> vector<32x96xf32>
    %c2 = arith.constant 2 : index
    %c0_48 = arith.constant 0 : index
    %c0_49 = arith.constant 0 : index
    %135 = vector.load %arg2[%c2, %c0_48, %c0_49] : memref<4x96x32xf32, #tpu.memory_space<vmem>>, vector<1x96x32xf32>
    %136 = vector.shape_cast %135 : vector<1x96x32xf32> to vector<96x32xf32>
    %cst_50 = arith.constant dense<0.000000e+00> : vector<32x32xf32>
    %137 = tpu.matmul %134, %136, %cst_50 {dimension_numbers = #tpu.dot_dimension_numbers<[1], [0], [0], [1], [0, 0, 1, 1], [], []>} : vector<32x96xf32>, vector<96x32xf32>, vector<32x32xf32> -> vector<32x32xf32>
    %c2_51 = arith.constant 2 : index
    %c0_52 = arith.constant 0 : index
    %138 = vector.load %arg3[%c2_51, %c0_52] : memref<10x32xf32, #tpu.memory_space<vmem>>, vector<1x32xf32>
    %139 = vector.broadcast %138 : vector<1x32xf32> to vector<32x32xf32>
    %140 = arith.addf %137, %139 : vector<32x32xf32>
    %cst_53 = arith.constant dense<0.000000e+00> : vector<32xf32>
    %141 = vector.multi_reduction <add>, %140, %cst_53 [1] : vector<32x32xf32> to vector<32xf32>
    %142 = vector.shape_cast %141 : vector<32xf32> to vector<32x1xf32>
    %143 = arith.mulf %140, %140 : vector<32x32xf32>
    %cst_54 = arith.constant dense<0.000000e+00> : vector<32xf32>
    %144 = vector.multi_reduction <add>, %143, %cst_54 [1] : vector<32x32xf32> to vector<32xf32>
    %145 = vector.shape_cast %144 : vector<32xf32> to vector<32x1xf32>
    %cst_55 = arith.constant 3.125000e-02 : f32
    %146 = vector.broadcast %cst_55 : f32 to vector<32x1xf32>
    %147 = arith.mulf %142, %146 : vector<32x1xf32>
    %cst_56 = arith.constant 3.125000e-02 : f32
    %148 = vector.broadcast %cst_56 : f32 to vector<32x1xf32>
    %149 = arith.mulf %145, %148 : vector<32x1xf32>
    %150 = arith.mulf %147, %147 : vector<32x1xf32>
    %151 = arith.subf %149, %150 : vector<32x1xf32>
    %cst_57 = arith.constant 0.000000e+00 : f32
    %152 = vector.broadcast %cst_57 : f32 to vector<32x1xf32>
    %153 = arith.maximumf %151, %152 : vector<32x1xf32>
    %154 = vector.broadcast %147 : vector<32x1xf32> to vector<32x32xf32>
    %155 = arith.subf %140, %154 : vector<32x32xf32>
    %cst_58 = arith.constant 9.99999974E-5 : f32
    %156 = vector.broadcast %cst_58 : f32 to vector<32x1xf32>
    %157 = arith.addf %153, %156 : vector<32x1xf32>
    %158 = math.rsqrt %157 : vector<32x1xf32>
    %159 = vector.broadcast %158 : vector<32x1xf32> to vector<32x32xf32>
    %160 = arith.mulf %155, %159 : vector<32x32xf32>
    %c5 = arith.constant 5 : index
    %c0_59 = arith.constant 0 : index
    %161 = vector.load %arg3[%c5, %c0_59] : memref<10x32xf32, #tpu.memory_space<vmem>>, vector<1x32xf32>
    %162 = vector.broadcast %161 : vector<1x32xf32> to vector<32x32xf32>
    %163 = arith.mulf %160, %162 : vector<32x32xf32>
    %c8 = arith.constant 8 : index
    %c0_60 = arith.constant 0 : index
    %164 = vector.load %arg3[%c8, %c0_60] : memref<10x32xf32, #tpu.memory_space<vmem>>, vector<1x32xf32>
    %165 = vector.broadcast %164 : vector<1x32xf32> to vector<32x32xf32>
    %166 = arith.addf %163, %165 : vector<32x32xf32>
    %cst_61 = arith.constant 0.000000e+00 : f32
    %167 = vector.broadcast %cst_61 : f32 to vector<32x32xf32>
    %168 = arith.maximumf %166, %167 : vector<32x32xf32>
    %c3_62 = arith.constant 3 : index
    %c0_63 = arith.constant 0 : index
    %c0_64 = arith.constant 0 : index
    %169 = vector.load %arg2[%c3_62, %c0_63, %c0_64] : memref<4x96x32xf32, #tpu.memory_space<vmem>>, vector<1x96x32xf32>
    %170 = vector.shape_cast %169 : vector<1x96x32xf32> to vector<96x32xf32>
    %171 = vector.extract_strided_slice %170 {offsets = [0, 0], sizes = [32, 4], strides = [1, 1]} : vector<96x32xf32> to vector<32x4xf32>
    %c9 = arith.constant 9 : index
    %c0_65 = arith.constant 0 : index
    %172 = vector.load %arg3[%c9, %c0_65] : memref<10x32xf32, #tpu.memory_space<vmem>>, vector<1x4xf32>
    %cst_66 = arith.constant dense<0.000000e+00> : vector<32x4xf32>
    %173 = tpu.matmul %168, %171, %cst_66 {dimension_numbers = #tpu.dot_dimension_numbers<[1], [0], [0], [1], [0, 0, 1, 1], [], []>} : vector<32x32xf32>, vector<32x4xf32>, vector<32x4xf32> -> vector<32x4xf32>
    %174 = arith.addf %2, %173 : vector<32x4xf32>
    %175 = vector.broadcast %172 : vector<1x4xf32> to vector<32x4xf32>
    %176 = arith.addf %174, %175 : vector<32x4xf32>
    %177 = arith.mulf %176, %8 : vector<32x4xf32>
    %178 = vector.shape_cast %177 : vector<32x4xf32> to vector<2x16x4xf32>
    %179 = tpu.transpose %178, [0, 2, 1] : vector<2x16x4xf32> -> vector<2x4x16xf32>
    %c0_67 = arith.constant 0 : index
    %c0_68 = arith.constant 0 : index
    %c0_69 = arith.constant 0 : index
    %180 = vector.load %arg4[%c0_67, %c0_68, %c0_69] : memref<2x4x16xf32, #tpu.memory_space<vmem>>, vector<2x4x16xf32>
    tpu.vector_store %arg4[%c0_67, %c0_68, %c0_69], %179 {strides = array<i32>} : memref<2x4x16xf32, #tpu.memory_space<vmem>>, vector<2x4x16xf32>,
    return
  }
}

</mosaic_0001>

<bundles_post_ra>
// kernel: tpu_custom_call.1
= control target key start
LH: loop header
LB: loop body
LE: loop exit
PB: predicated region body
PF: predicated region fallthrough
CT: control target
= control target key end

     0   :  { %s2023_s0 = inlined_call_operand.vmem [shape: f32[2,4,16], index: 0, kind: input, shape index: {}]   ;;  %s2024_s1 = inlined_call_operand.vmem [shape: f32[2,1,16], index: 1, kind: input, shape index: {}]   ;;  %s2025_s2 = inlined_call_operand.vmem [shape: f32[4,96,32], index: 2, kind: input, shape index: {}]   ;;  %s2026_s3 = inlined_call_operand.vmem [shape: f32[10,32], index: 3, kind: input, shape index: {}]   ;;  %s2027_s4 = inlined_call_operand.hbm [shape: f32[2,4,16], index: 4, kind: output, shape index: {}]  }
   0x1   :  { %v19_v0 = vld [vmem:[%s2023_s0 + $0x4] sm:$0xf]  ;;  %v18_v1 = vld [vmem:[%s2023_s0] sm:$0xf] }
   0x2   :  { %52 = vxpose.xlu1.b32.start.end [1/1] (short) (narrow) %v19_v0, 16  ;;  %20 = vxpose.xlu0.b32.start.end [1/1] (short) (narrow) %v18_v1, 16 }
   0x3   :  { %9 = vsyncpa [#allocation3], 0  ;;  %v1250_v2 = vld [vmem:[%s2024_s1 + $0x1] ss:$0 sm:$0xff]  ;;  %v1249_v3 = vld [vmem:[%s2024_s1] ss:$0 sm:$0xff]  ;;  %v162_v4 = vlaneseq }
   0x4   :  { %v311_v11 = vld [vmem:[%s2025_s2] sm:$0xff]  ;;  %v312_v12 = vld [vmem:[%s2025_s2 + $0x8] sm:$0xff]  ;;  %vm331_vm0 = vcmask 1043456   ;;  %vm1553_vm1 = vmmov 1   ;;  %s1554_s25 = smov 4   ;;  %s1555_s26 = smov 8  }
   0x5   :  { %v1600_v7 = vshrl.u32 %v162_v4, 7  ;;  %v1436_v13 = vpack.c.bf16 %v312_v12, %v311_v11  ;;  %vm1437_vm2 = vmpackc.low %vm331_vm0, %vm1553_vm1  ;;  %vm301_vm8 = vcmask 31744   ;;  %vm306_vm9 = vcmask 64512   ;;  %v1251_v4 = vld [vmem:[%s2026_s3] ss:$0 sm:$0xff]  ;;  %s1556_s30 = smov 32  }
   0x6   :  { %vm318_vm10 = vcmask 97280   ;;  %vm420_vm12 = vcmask 261120   ;;  %s1557_s5 = smov 64   ;;  %vm571_vm13 = vcmask 523264   ;;  %vm594_vm14 = vcmask 785408  }
   0x7   :  { %130 = vxpose.xlu1.b32.start [1/4] (short) (narrow) %v1250_v2, 16  ;;  %98 = vxpose.xlu0.b32.start [1/4] (short) (narrow) %v1249_v3, 16  ;;  %v166_v10 = vadd.s32 24, %v1600_v7  ;;  %v164_v19 = vadd.s32 8, %v1600_v7  ;;  %vm252_vm3 = vcmp.lt.s32.totalorder %v1600_v7, 7  ;;  %vm231_vm5 = vcmp.lt.s32.totalorder %v1600_v7, 1 }
   0x8   :  { %1438 = vmatprep.subr.msk.bf16.mxu0 %vm1437_vm2, %v1436_v13  ;;  %v171_v46 = vand.u32 15, %v1600_v7  ;;  %v165_v48 = vadd.s32 16, %v1600_v7  ;;  %v1290_v57 = vld [vmem:[%s2026_s3 + $0x2] ss:$0 sm:$0xff]  ;;  %vm1230_vm15 = vcmask 125952  }
   0x9   :  { %v192_v18 = vand.u32 15, %v166_v10  ;;  %1441 = vmatpush3.bf16.msk.msra.mxu0 %vm1437_vm2, %v1436_v13  ;;  %v178_v26 = vand.u32 15, %v164_v19 }
   0xa   :  { %vm1666_vm7 = vcmp.ge.s32.totalorder %v171_v46, 1  ;;  %v185_v52 = vand.u32 15, %v165_v48 }
   0xb   :  { %131 = vxpose.xlu1.b32.cont [2/4] (short) (narrow) %v1250_v2, 16  ;;  %99 = vxpose.xlu0.b32.cont [2/4] (short) (narrow) %v1249_v3, 16  ;;  %vm1633_vm4 = vcmp.lt.s32.totalorder %v192_v18, 15  ;;  %vm1650_vm6 = vcmp.lt.s32.totalorder %v178_v26, 15 }
   0xc   :  { %vm1675_vm11 = vcmp.ge.s32.totalorder %v185_v52, 1 }
   0xf   :  { %132 = vxpose.xlu1.b32.cont [3/4] (short) (narrow) %v1250_v2, 16  ;;  %100 = vxpose.xlu0.b32.cont [3/4] (short) (narrow) %v1249_v3, 16 }
  0x13   :  { %133 = vxpose.xlu1.b32.end [4/4] (short) (narrow) %v1250_v2, 16  ;;  %101 = vxpose.xlu0.b32.end [4/4] (short) (narrow) %v1249_v3, 16 }
  0x82   :  { %v1596_v5 = vpop.trf.xlu1  ;;  %v1598_v6 = vpop.trf.xlu0 }
  0x86   :  { %v1602_v8 = vpop.trf.xlu1  ;;  %v1604_v9 = vpop.trf.xlu0 }
  0x8a   :  { %v1613_v14 = vpop.trf.xlu1  ;;  %v1615_v15 = vpop.trf.xlu0 }
  0x8b   :  { %v225_v16 = vmul.f32 %v1613_v14, %v1596_v5  ;;  %v223_v17 = vmul.f32 %v1615_v15, %v1598_v6 }
  0x8d   :  { %277 = vrot.lane.b32.xlu1 %v225_v16, %s1554_s25  ;;  %273 = vrot.lane.b32.xlu0 %v223_v17, %s1554_s25  ;;  %v248_v25 = vrot.slane %v223_v17, 1  ;;  %v229_v31 = vrot.slane %v225_v16, 7  ;;  %v227_v32 = vrot.slane %v223_v17, 7  ;;  %v250_v35 = vrot.slane %v225_v16, 1 }
  0x8e   :  { %v1624_v20 = vpop.trf.xlu1  ;;  %v1626_v21 = vpop.trf.xlu0 }
  0x8f   :  { %v226_v22 = vmul.f32 %v1624_v20, %v1602_v8  ;;  %v224_v23 = vmul.f32 %v1626_v21, %v1604_v9 }
  0x91   :  { %v230_v27 = vrot.slane %v226_v22, 7  ;;  %279 = vrot.lane.b32.xlu0 %v226_v22, %s1554_s25  ;;  %275 = vrot.lane.b32.xlu1 %v224_v23, %s1554_s25  ;;  %v228_v28 = vrot.slane %v224_v23, 7  ;;  %v251_v29 = vrot.slane %v226_v22, 1  ;;  %v249_v30 = vrot.slane %v224_v23, 1 }
  0x93   :  { %v256_v33 = vsel %vm252_vm3, %v251_v29, %v248_v25  ;;  %v255_v34 = vsel %vm252_vm3, %v248_v25, %v249_v30  ;;  %v233_v37 = vsel %vm231_vm5, %v228_v28, %v229_v31  ;;  %v235_v38 = vsel %vm231_vm5, %v230_v27, %v227_v32 }
  0x94   :  { %v268_v36 = vsel %vm1633_vm4, %v256_v33, 0.0  ;;  %v254_v40 = vsel %vm252_vm3, %v249_v30, %v250_v35  ;;  %v234_v41 = vsel %vm231_vm5, %v227_v32, %v228_v28  ;;  %v232_v42 = vsel %vm231_vm5, %v229_v31, %v230_v27 }
  0x95   :  { %295 = vrot.lane.b32.xlu0 %v268_v36, %s1555_s26  ;;  %289 = vrot.lane.b32.xlu1 %v255_v34, %s1555_s26  ;;  %v266_v43 = vsel %vm1650_vm6, %v254_v40, 0.0  ;;  %v253_v44 = vsel %vm252_vm3, %v250_v35, %v251_v29  ;;  %v244_v51 = vsel %vm1666_vm7, %v235_v38, 0.0  ;;  %v246_v61 = vsel %vm1675_vm11, %v233_v37, 0.0  ;;  %v1259_v35 = vld [vmem:[%s2025_s2 + $0x60] sm:$0xff]  ;;  %v1260_v36 = vld [vmem:[%s2025_s2 + $0x68] sm:$0xff] }
  0x96   :  { %v1261_v37 = vld [vmem:[%s2025_s2 + $0x70] sm:$0xff]  ;;  %v1442_v38 = vpack.c.bf16 %v1260_v36, %v1259_v35  ;;  %v1262_v40 = vld [vmem:[%s2025_s2 + $0x78] sm:$0xff] }
  0x98   :  { %1443 = vmatprep.subr.bf16.mxu1 %v1442_v38 }
  0x99   :  { %291 = vrot.lane.b32.xlu1 %v266_v43, %s1555_s26  ;;  %v1264_v43 = vld [vmem:[%s2025_s2 + $0x88] sm:$0xff]  ;;  %1445 = vmatpush3.bf16.msra.mxu1 %v1442_v38 }
  0x9d   :  { %293 = vrot.lane.b32.xlu1 %v253_v44, %s1555_s26 }
  0xff   :  { %v278_v45 = vpop.permute.xlu1 %277  ;;  %v274_v47 = vpop.permute.xlu0 %273 }
 0x100   :  { %v302_v53 = vsel %vm301_vm8, %v244_v51, %v274_v47  ;;  %v304_v63 = vsel %vm301_vm8, %v246_v61, %v278_v45 }
 0x103   :  { %v276_v50 = vpop.permute.xlu1 %275  ;;  %v280_v55 = vpop.permute.xlu0 %279 }
 0x104   :  { %v303_v58 = vsel %vm301_vm8, %v234_v41, %v276_v50  ;;  %v305_v1 = vsel %vm301_vm8, %v232_v42, %v280_v55  ;;  %v1446_v41 = vpack.c.bf16 %v1262_v40, %v1261_v37  ;;  %v1263_v42 = vld [vmem:[%s2025_s2 + $0x80] sm:$0xff] }
 0x105   :  { %v1450_v44 = vpack.c.bf16 %v1264_v43, %v1263_v42 }
 0x106   :  { %1447 = vmatprep.subr.bf16.mxu1 %v1446_v41 }
 0x107   :  { %v290_v54 = vpop.permute.xlu1 %289  ;;  %v296_v62 = vpop.permute.xlu0 %295  ;;  %1449 = vmatpush3.bf16.msra.mxu1 %v1446_v41  ;;  %v1268_v41 = vld [vmem:[%s2025_s2 + $0xa8] sm:$0xff] }
 0x108   :  { %v307_v56 = vsel %vm306_vm9, %v302_v53, %v290_v54  ;;  %v310_v3 = vsel %vm306_vm9, %v305_v1, %v296_v62  ;;  %1451 = vmatprep.subr.bf16.mxu1 %v1450_v44 }
 0x109   :  { %1356 = vmatprep.mubr.msk.f32.mxu0 %vm318_vm10, %v307_v56 }
 0x10b   :  { %v292_v59 = vpop.permute.xlu1 %291  ;;  %1453 = vmatpush3.bf16.msra.mxu1 %v1450_v44 }
 0x10c   :  { %v308_v60 = vsel %vm306_vm9, %v303_v58, %v292_v59 }
 0x10d   :  { %1357 = vmatmul.mubr.msk.f32.vlgmr.msra.gmra.mrb[0].mxu0 %vm318_vm10, %v308_v60 }
 0x10f   :  { %v294_v0 = vpop.permute.xlu1 %293 }
 0x110   :  { %v309_v2 = vsel %vm306_vm9, %v304_v63, %v294_v0 }
 0x111   :  { %1359 = vmatprep.mubr.msk.f32.mxu0 %vm318_vm10, %v309_v2 }
 0x112   :  { %1360 = vmatmul.mubr.msk.f32.gmra.mrb[2].mxu0 %vm318_vm10, %v310_v3 }
 0x1e0   :  { %v1358_v10 = vpop.f32.mrb[0].mxu0 }
 0x1e1   :  { %v1693_v11 = vadd.f32 %v1358_v10, %v1251_v4  ;;  %v401_v12 = vpop.f32.mrb[1].mxu0 }
 0x1e2   :  { %v1695_v13 = vadd.f32 %v1251_v4, %v401_v12 }
 0x1e3   :  { %v424_v16 = vsel %vm420_vm12, %v1693_v11, 0.0  ;;  %v434_v17 = vmul.f32 %v1693_v11, %v1693_v11 }
 0x1e4   :  { %425 = vadd.xlane.f32.xlu0 %v424_v16  ;;  %v421_v18 = vsel %vm420_vm12, %v1695_v13, 0.0  ;;  %v433_v19 = vmul.f32 %v1695_v13, %v1695_v13 }
 0x1e5   :  { %422 = vadd.xlane.f32.xlu1 %v421_v18  ;;  %v1361_v22 = vpop.f32.mrb[2].mxu0  ;;  %v440_v26 = vsel %vm420_vm12, %v434_v17, 0.0 }
 0x1e6   :  { %v411_v23 = vpop.f32.mrb[3].mxu0  ;;  %v1708_v27 = vadd.f32 %v1361_v22, %v1251_v4  ;;  %v437_v28 = vsel %vm420_vm12, %v433_v19, 0.0 }
 0x1e7   :  { %v1705_v25 = vadd.f32 %v1251_v4, %v411_v23 }
 0x1e8   :  { %441 = vadd.xlane.f32.xlu0 %v440_v26  ;;  %v436_v32 = vmul.f32 %v1708_v27, %v1708_v27  ;;  %v430_v33 = vsel %vm420_vm12, %v1708_v27, 0.0 }
 0x1e9   :  { %438 = vadd.xlane.f32.xlu1 %v437_v28  ;;  %v435_v29 = vmul.f32 %v1705_v25, %v1705_v25  ;;  %v427_v30 = vsel %vm420_vm12, %v1705_v25, 0.0 }
 0x1ea   :  { %v446_v34 = vsel %vm420_vm12, %v436_v32, 0.0 }
 0x1eb   :  { %v443_v31 = vsel %vm420_vm12, %v435_v29, 0.0 }
 0x1ec   :  { %428 = vadd.xlane.f32.xlu0 %v427_v30  ;;  %v1265_v30 = vld [vmem:[%s2025_s2 + $0x90] sm:$0xff] }
 0x1ed   :  { %444 = vadd.xlane.f32.xlu1 %v443_v31  ;;  %v1266_v31 = vld [vmem:[%s2025_s2 + $0x98] sm:$0xff] }
 0x1ee   :  { %v1454_v35 = vpack.c.bf16 %v1266_v31, %v1265_v30 }
 0x1f0   :  { %431 = vadd.xlane.f32.xlu0 %v430_v33  ;;  %1455 = vmatprep.subr.bf16.mxu1 %v1454_v35 }
 0x1f1   :  { %447 = vadd.xlane.f32.xlu1 %v446_v34  ;;  %v1257_v34 = vld [vmem:[%s2026_s3 + $0x3] ss:$0 sm:$0xff]  ;;  %1457 = vmatpush3.bf16.msra.mxu1 %v1454_v35 }
 0x271   :  { %v426_v45 = vpop.xlane.xlu0 %425 }
 0x272   :  { %v450_v46 = vmul.f32 0.03125, %v426_v45  ;;  %v423_v47 = vpop.xlane.xlu1 %422 }
 0x273   :  { %v449_v48 = vmul.f32 0.03125, %v423_v47 }
 0x274   :  { %v458_v51 = vmul.f32 %v450_v46, %v450_v46  ;;  %v470_v29 = vsub.f32 %v1693_v11, %v450_v46  ;;  %v1258_v11 = vld [vmem:[%s2026_s3 + $0x6] ss:$0 sm:$0xff] }
 0x275   :  { %v442_v50 = vpop.xlane.xlu0 %441  ;;  %v457_v54 = vmul.f32 %v449_v48, %v449_v48  ;;  %v469_v33 = vsub.f32 %v1695_v13, %v449_v48  ;;  %v1267_v13 = vld [vmem:[%s2025_s2 + $0xa0] sm:$0xff] }
 0x276   :  { %v454_v52 = vmul.f32 0.03125, %v442_v50  ;;  %v439_v53 = vpop.xlane.xlu1 %438  ;;  %v1458_v43 = vpack.c.bf16 %v1268_v41, %v1267_v13 }
 0x277   :  { %v453_v55 = vmul.f32 0.03125, %v439_v53  ;;  %v1270_v53 = vld [vmem:[%s2025_s2 + $0xb8] sm:$0xff] }
 0x278   :  { %v462_v56 = vsub.f32 %v454_v52, %v458_v51  ;;  %1459 = vmatprep.subr.bf16.mxu1 %v1458_v43  ;;  %v1269_v52 = vld [vmem:[%s2025_s2 + $0xb0] sm:$0xff] }
 0x279   :  { %v461_v58 = vsub.f32 %v453_v55, %v457_v54  ;;  %v429_v59 = vpop.xlane.xlu0 %428  ;;  %1461 = vmatpush3.bf16.msra.mxu1 %v1458_v43 }
 0x27a   :  { %v466_v60 = vmax.f32 %v462_v56, 0.0  ;;  %v451_v61 = vmul.f32 0.03125, %v429_v59  ;;  %v445_v62 = vpop.xlane.xlu1 %444  ;;  %v1462_v56 = vpack.c.bf16 %v1270_v53, %v1269_v52  ;;  %v1271_v53 = vld [vmem:[%s2026_s3 + $0x1] ss:$0 sm:$0xff] }
 0x27b   :  { %v465_v63 = vmax.f32 %v461_v58, 0.0  ;;  %v455_v0 = vmul.f32 0.03125, %v445_v62 }
 0x27c   :  { %v474_v1 = vadd.f32 0.0001, %v466_v60  ;;  %v459_v2 = vmul.f32 %v451_v61, %v451_v61  ;;  %v471_v44 = vsub.f32 %v1705_v25, %v451_v61  ;;  %1463 = vmatprep.subr.bf16.mxu1 %v1462_v56 }
 0x27d   :  { %v473_v3 = vadd.f32 0.0001, %v465_v63  ;;  %v432_v4 = vpop.xlane.xlu0 %431  ;;  %1465 = vmatpush3.bf16.msra.mxu1 %v1462_v56 }
 0x27e   :  { %1505 = vrsqrt.f32 %v474_v1  ;;  %v463_v10 = vsub.f32 %v455_v0, %v459_v2  ;;  %v452_v12 = vmul.f32 0.03125, %v432_v4  ;;  %v448_v16 = vpop.xlane.xlu1 %447 }
 0x27f   :  { %1507 = vrsqrt.f32 %v473_v3  ;;  %v456_v17 = vmul.f32 0.03125, %v448_v16 }
 0x280   :  { %v467_v18 = vmax.f32 %v463_v10, 0.0  ;;  %v460_v19 = vmul.f32 %v452_v12, %v452_v12  ;;  %v472_v54 = vsub.f32 %v1708_v27, %v452_v12 }
 0x282   :  { %v475_v22 = vadd.f32 0.0001, %v467_v18  ;;  %v464_v23 = vsub.f32 %v456_v17, %v460_v19 }
 0x284   :  { %1509 = vrsqrt.f32 %v475_v22  ;;  %v468_v26 = vmax.f32 %v464_v23, 0.0 }
 0x286   :  { %v476_v28 = vadd.f32 0.0001, %v468_v26 }
 0x288   :  { %v1506_v32 = vpop.eup %1505  ;;  %1511 = vrsqrt.f32 %v476_v28 }
 0x289   :  { %v1508_v36 = vpop.eup %1507  ;;  %v482_v37 = vmul.f32 %v1506_v32, %v470_v29 }
 0x28a   :  { %v481_v38 = vmul.f32 %v1508_v36, %v469_v33 }
 0x28b   :  { %v491_v40 = vmul.f32 %v1257_v34, %v482_v37 }
 0x28c   :  { %v490_v42 = vmul.f32 %v1257_v34, %v481_v38 }
 0x28d   :  { %v500_v45 = vadd.f32 %v1258_v11, %v491_v40 }
 0x28e   :  { %v1510_v46 = vpop.eup %1509  ;;  %v499_v47 = vadd.f32 %v1258_v11, %v490_v42 }
 0x28f   :  { %v504_v48 = vmax.f32 %v500_v45, 0.0  ;;  %v483_v50 = vmul.f32 %v1510_v46, %v471_v44 }
 0x290   :  { %v503_v51 = vmax.f32 %v499_v47, 0.0 }
 0x291   :  { %v508_v25 = vmul.f32 %v504_v48, %v1626_v21  ;;  %v492_v55 = vmul.f32 %v1257_v34, %v483_v50 }
 0x292   :  { %v1512_v58 = vpop.eup %1511  ;;  %v507_v59 = vmul.f32 %v503_v51, %v1615_v15 }
 0x293   :  { %541 = vrot.lane.b32.xlu1 %v508_v25, %s1556_s30  ;;  %v524_v60 = vrot.slane %v508_v25, 1  ;;  %v501_v61 = vadd.f32 %v1258_v11, %v492_v55  ;;  %v484_v62 = vmul.f32 %v1512_v58, %v472_v54  ;;  %v512_v63 = vrot.slane %v508_v25, 7 }
 0x294   :  { %539 = vrot.lane.b32.xlu0 %v507_v59, %s1556_s30  ;;  %v523_v0 = vrot.slane %v507_v59, 1  ;;  %v511_v1 = vrot.slane %v507_v59, 7 }
 0x295   :  { %v505_v27 = vmax.f32 %v501_v61, 0.0  ;;  %v493_v2 = vmul.f32 %v1257_v34, %v484_v62 }
 0x296   :  { %v529_v3 = vsel %vm252_vm3, %v523_v0, %v524_v60  ;;  %v517_v4 = vsel %vm231_vm5, %v511_v1, %v512_v63 }
 0x297   :  { %555 = vrot.lane.b32.xlu1 %v529_v3, %s1557_s5  ;;  %v509_v10 = vmul.f32 %v505_v27, %v1613_v14  ;;  %v502_v12 = vadd.f32 %v1258_v11, %v493_v2 }
 0x299   :  { %v513_v16 = vrot.slane %v509_v10, 7  ;;  %v506_v17 = vmax.f32 %v502_v12, 0.0  ;;  %v525_v18 = vrot.slane %v509_v10, 1 }
 0x29b   :  { %543 = vrot.lane.b32.xlu1 %v509_v10, %s1556_s30  ;;  %v510_v19 = vmul.f32 %v506_v17, %v1624_v20  ;;  %v516_v22 = vsel %vm231_vm5, %v512_v63, %v513_v16  ;;  %v528_v28 = vsel %vm252_vm3, %v524_v60, %v525_v18 }
 0x29c   :  { %v532_v32 = vsel %vm1650_vm6, %v528_v28, 0.0  ;;  %v521_v44 = vsel %vm1675_vm11, %v516_v22, 0.0  ;;  %v1280_v22 = vld [vmem:[%s2025_s2 + $0xd0] sm:$0xff] }
 0x29d   :  { %545 = vrot.lane.b32.xlu0 %v510_v19, %s1556_s30  ;;  %v514_v23 = vrot.slane %v510_v19, 7  ;;  %v526_v26 = vrot.slane %v510_v19, 1  ;;  %v1279_v19 = vld [vmem:[%s2025_s2 + $0xc8] sm:$0xff] }
 0x29f   :  { %v527_v29 = vsel %vm252_vm3, %v525_v18, %v526_v26  ;;  %v518_v30 = vsel %vm231_vm5, %v514_v23, %v511_v1  ;;  %v515_v31 = vsel %vm231_vm5, %v513_v16, %v514_v23  ;;  %v530_v33 = vsel %vm252_vm3, %v526_v26, %v523_v0  ;;  %v1278_v18 = vld [vmem:[%s2025_s2 + $0xc0] sm:$0xff]  ;;  %v1281_v26 = vld [vmem:[%s2025_s2 + $0xd8] sm:$0xff] }
 0x2a0   :  { %559 = vrot.lane.b32.xlu1 %v527_v29, %s1557_s5  ;;  %v534_v34 = vsel %vm1633_vm4, %v530_v33, 0.0  ;;  %v519_v37 = vsel %vm1666_vm7, %v518_v30, 0.0  ;;  %v1466_v23 = vpack.c.bf16 %v1279_v19, %v1278_v18  ;;  %v1470_v28 = vpack.c.bf16 %v1281_v26, %v1280_v22  ;;  %v1282_v29 = vld [vmem:[%s2025_s2 + $0xe0] sm:$0xff]  ;;  %v1283_v30 = vld [vmem:[%s2025_s2 + $0xe8] sm:$0xff] }
 0x2a1   :  { %557 = vrot.lane.b32.xlu0 %v532_v32, %s1557_s5 }
 0x2a2   :  { %1467 = vmatprep.subr.bf16.mxu0 %v1466_v23 }
 0x2a3   :  { %1469 = vmatpush3.bf16.msra.mxu0 %v1466_v23 }
 0x2a4   :  { %1471 = vmatprep.subr.bf16.mxu0 %v1470_v28 }
 0x2a5   :  { %561 = vrot.lane.b32.xlu0 %v534_v34, %s1557_s5 }
 0x2a7   :  { %1473 = vmatpush3.bf16.msra.mxu0 %v1470_v28  ;;  %v1287_v28 = vld [vmem:[%s2025_s2 + $0x108] sm:$0xff] }
 0x305   :  { %v542_v35 = vpop.permute.xlu1 %541 }
 0x306   :  { %v540_v36 = vpop.permute.xlu0 %539  ;;  %v568_v43 = vsel %vm420_vm12, %v517_v4, %v542_v35 }
 0x307   :  { %v567_v11 = vsel %vm420_vm12, %v519_v37, %v540_v36 }
 0x309   :  { %v556_v38 = vpop.permute.xlu1 %555 }
 0x30a   :  { %v572_v40 = vsel %vm571_vm13, %v567_v11, %v556_v38 }
 0x30b   :  { %1386 = vmatprep.mubr.msk.f32.mxu1 %vm594_vm14, %v572_v40 }
 0x30d   :  { %v544_v13 = vpop.permute.xlu1 %543 }
 0x30e   :  { %v569_v46 = vsel %vm420_vm12, %v521_v44, %v544_v13 }
 0x30f   :  { %v546_v41 = vpop.permute.xlu0 %545 }
 0x310   :  { %v570_v50 = vsel %vm420_vm12, %v515_v31, %v546_v41  ;;  %v1474_v31 = vpack.c.bf16 %v1283_v30, %v1282_v29 }
 0x312   :  { %v560_v42 = vpop.permute.xlu1 %559  ;;  %1475 = vmatprep.subr.bf16.mxu0 %v1474_v31 }
 0x313   :  { %v558_v45 = vpop.permute.xlu0 %557  ;;  %v574_v48 = vsel %vm571_vm13, %v569_v46, %v560_v42  ;;  %1477 = vmatpush3.bf16.msra.mxu0 %v1474_v31 }
 0x314   :  { %v573_v47 = vsel %vm571_vm13, %v568_v43, %v558_v45 }
 0x315   :  { %1387 = vmatmul.mubr.msk.f32.vlgmr.msra.gmra.mrb[0].mxu1 %vm594_vm14, %v573_v47 }
 0x316   :  { %1389 = vmatprep.mubr.msk.f32.mxu1 %vm594_vm14, %v574_v48 }
 0x317   :  { %v562_v51 = vpop.permute.xlu0 %561 }
 0x318   :  { %v575_v52 = vsel %vm571_vm13, %v570_v50, %v562_v51 }
 0x319   :  { %1390 = vmatmul.mubr.msk.f32.gmra.mrb[2].mxu1 %vm594_vm14, %v575_v52 }
 0x3e8   :  { %v1388_v54 = vpop.f32.mrb[0].mxu1 }
 0x3e9   :  { %v1818_v25 = vadd.f32 %v1388_v54, %v1271_v53  ;;  %v673_v55 = vpop.f32.mrb[1].mxu1 }
 0x3ea   :  { %v1820_v56 = vadd.f32 %v1271_v53, %v673_v55 }
 0x3eb   :  { %v695_v58 = vsel %vm420_vm12, %v1818_v25, 0.0  ;;  %v705_v59 = vmul.f32 %v1818_v25, %v1818_v25 }
 0x3ec   :  { %696 = vadd.xlane.f32.xlu0 %v695_v58  ;;  %v1391_v60 = vpop.f32.mrb[2].mxu1  ;;  %v692_v61 = vsel %vm420_vm12, %v1820_v56, 0.0  ;;  %v704_v62 = vmul.f32 %v1820_v56, %v1820_v56 }
 0x3ed   :  { %693 = vadd.xlane.f32.xlu1 %v692_v61  ;;  %v683_v63 = vpop.f32.mrb[3].mxu1  ;;  %v711_v1 = vsel %vm420_vm12, %v705_v59, 0.0  ;;  %v1833_v27 = vadd.f32 %v1391_v60, %v1271_v53 }
 0x3ee   :  { %v1830_v0 = vadd.f32 %v1271_v53, %v683_v63  ;;  %v708_v2 = vsel %vm420_vm12, %v704_v62, 0.0 }
 0x3ef   :  { %v707_v12 = vmul.f32 %v1833_v27, %v1833_v27  ;;  %v701_v16 = vsel %vm420_vm12, %v1833_v27, 0.0 }
 0x3f0   :  { %712 = vadd.xlane.f32.xlu0 %v711_v1  ;;  %v706_v3 = vmul.f32 %v1830_v0, %v1830_v0  ;;  %v698_v4 = vsel %vm420_vm12, %v1830_v0, 0.0 }
 0x3f1   :  { %709 = vadd.xlane.f32.xlu1 %v708_v2  ;;  %v717_v17 = vsel %vm420_vm12, %v707_v12, 0.0 }
 0x3f2   :  { %v714_v10 = vsel %vm420_vm12, %v706_v3, 0.0 }
 0x3f4   :  { %699 = vadd.xlane.f32.xlu0 %v698_v4  ;;  %v1284_v4 = vld [vmem:[%s2025_s2 + $0xf0] sm:$0xff] }
 0x3f5   :  { %715 = vadd.xlane.f32.xlu1 %v714_v10  ;;  %v1285_v10 = vld [vmem:[%s2025_s2 + $0xf8] sm:$0xff] }
 0x3f6   :  { %v1478_v18 = vpack.c.bf16 %v1285_v10, %v1284_v4 }
 0x3f8   :  { %702 = vadd.xlane.f32.xlu0 %v701_v16  ;;  %1479 = vmatprep.subr.bf16.mxu0 %v1478_v18 }
 0x3f9   :  { %718 = vadd.xlane.f32.xlu1 %v717_v17  ;;  %v1276_v17 = vld [vmem:[%s2026_s3 + $0x4] ss:$0 sm:$0xff]  ;;  %1481 = vmatpush3.bf16.msra.mxu0 %v1478_v18 }
 0x479   :  { %v697_v32 = vpop.xlane.xlu0 %696 }
 0x47a   :  { %v721_v33 = vmul.f32 0.03125, %v697_v32  ;;  %v694_v34 = vpop.xlane.xlu1 %693 }
 0x47b   :  { %v720_v35 = vmul.f32 0.03125, %v694_v34 }
 0x47c   :  { %v729_v37 = vmul.f32 %v721_v33, %v721_v33  ;;  %v741_v3 = vsub.f32 %v1818_v25, %v721_v33  ;;  %v1277_v25 = vld [vmem:[%s2026_s3 + $0x7] ss:$0 sm:$0xff] }
 0x47d   :  { %v713_v36 = vpop.xlane.xlu0 %712  ;;  %v728_v40 = vmul.f32 %v720_v35, %v720_v35  ;;  %v740_v16 = vsub.f32 %v1820_v56, %v720_v35  ;;  %v1286_v56 = vld [vmem:[%s2025_s2 + $0x100] sm:$0xff] }
 0x47e   :  { %v725_v11 = vmul.f32 0.03125, %v713_v36  ;;  %v710_v38 = vpop.xlane.xlu1 %709  ;;  %v1482_v30 = vpack.c.bf16 %v1287_v28, %v1286_v56 }
 0x47f   :  { %v724_v13 = vmul.f32 0.03125, %v710_v38  ;;  %v1289_v38 = vld [vmem:[%s2025_s2 + $0x118] sm:$0xff] }
 0x480   :  { %v733_v41 = vsub.f32 %v725_v11, %v729_v37  ;;  %1483 = vmatprep.subr.bf16.mxu0 %v1482_v30  ;;  %v1288_v11 = vld [vmem:[%s2025_s2 + $0x110] sm:$0xff] }
 0x481   :  { %v732_v42 = vsub.f32 %v724_v13, %v728_v40  ;;  %v700_v43 = vpop.xlane.xlu0 %699  ;;  %1485 = vmatpush3.bf16.msra.mxu0 %v1482_v30 }
 0x482   :  { %v737_v44 = vmax.f32 %v733_v41, 0.0  ;;  %v722_v45 = vmul.f32 0.03125, %v700_v43  ;;  %v716_v46 = vpop.xlane.xlu1 %715  ;;  %v1486_v41 = vpack.c.bf16 %v1289_v38, %v1288_v11 }
 0x483   :  { %v736_v47 = vmax.f32 %v732_v42, 0.0  ;;  %v726_v48 = vmul.f32 0.03125, %v716_v46 }
 0x484   :  { %v745_v50 = vadd.f32 0.0001, %v737_v44  ;;  %v730_v51 = vmul.f32 %v722_v45, %v722_v45  ;;  %v742_v31 = vsub.f32 %v1830_v0, %v722_v45  ;;  %1487 = vmatprep.subr.bf16.mxu0 %v1486_v41 }
 0x485   :  { %v744_v52 = vadd.f32 0.0001, %v736_v47  ;;  %v703_v53 = vpop.xlane.xlu0 %702  ;;  %1489 = vmatpush3.bf16.msra.mxu0 %v1486_v41 }
 0x486   :  { %1513 = vrsqrt.f32 %v745_v50  ;;  %v734_v54 = vsub.f32 %v726_v48, %v730_v51  ;;  %v723_v55 = vmul.f32 0.03125, %v703_v53  ;;  %v719_v58 = vpop.xlane.xlu1 %718 }
 0x487   :  { %1515 = vrsqrt.f32 %v744_v52  ;;  %v727_v59 = vmul.f32 0.03125, %v719_v58 }
 0x488   :  { %v738_v60 = vmax.f32 %v734_v54, 0.0  ;;  %v731_v61 = vmul.f32 %v723_v55, %v723_v55  ;;  %v743_v40 = vsub.f32 %v1833_v27, %v723_v55 }
 0x48a   :  { %v746_v62 = vadd.f32 0.0001, %v738_v60  ;;  %v735_v63 = vsub.f32 %v727_v59, %v731_v61 }
 0x48c   :  { %1517 = vrsqrt.f32 %v746_v62  ;;  %v739_v1 = vmax.f32 %v735_v63, 0.0 }
 0x48e   :  { %v747_v2 = vadd.f32 0.0001, %v739_v1 }
 0x490   :  { %v1514_v12 = vpop.eup %1513  ;;  %1519 = vrsqrt.f32 %v747_v2 }
 0x491   :  { %v1516_v19 = vpop.eup %1515  ;;  %v753_v22 = vmul.f32 %v1514_v12, %v741_v3 }
 0x492   :  { %v752_v23 = vmul.f32 %v1516_v19, %v740_v16 }
 0x493   :  { %v762_v26 = vmul.f32 %v1276_v17, %v753_v22 }
 0x494   :  { %v761_v29 = vmul.f32 %v1276_v17, %v752_v23 }
 0x495   :  { %v771_v32 = vadd.f32 %v1277_v25, %v762_v26 }
 0x496   :  { %v1518_v33 = vpop.eup %1517  ;;  %v770_v34 = vadd.f32 %v1277_v25, %v761_v29 }
 0x497   :  { %v775_v35 = vmax.f32 %v771_v32, 0.0  ;;  %v754_v36 = vmul.f32 %v1518_v33, %v742_v31 }
 0x498   :  { %v774_v37 = vmax.f32 %v770_v34, 0.0 }
 0x499   :  { %v779_v0 = vmul.f32 %v775_v35, %v1626_v21  ;;  %v763_v13 = vmul.f32 %v1276_v17, %v754_v36 }
 0x49a   :  { %v1520_v42 = vpop.eup %1519  ;;  %v778_v43 = vmul.f32 %v774_v37, %v1615_v15 }
 0x49b   :  { %812 = vrot.lane.b32.xlu1 %v779_v0, %s1556_s30  ;;  %v795_v44 = vrot.slane %v779_v0, 1  ;;  %v772_v45 = vadd.f32 %v1277_v25, %v763_v13  ;;  %v755_v46 = vmul.f32 %v1520_v42, %v743_v40  ;;  %v783_v47 = vrot.slane %v779_v0, 7 }
 0x49c   :  { %810 = vrot.lane.b32.xlu0 %v778_v43, %s1556_s30  ;;  %v794_v48 = vrot.slane %v778_v43, 1  ;;  %v782_v50 = vrot.slane %v778_v43, 7 }
 0x49d   :  { %v776_v27 = vmax.f32 %v772_v45, 0.0  ;;  %v764_v51 = vmul.f32 %v1276_v17, %v755_v46 }
 0x49e   :  { %v800_v52 = vsel %vm252_vm3, %v794_v48, %v795_v44  ;;  %v788_v53 = vsel %vm231_vm5, %v782_v50, %v783_v47 }
 0x49f   :  { %826 = vrot.lane.b32.xlu1 %v800_v52, %s1557_s5  ;;  %v780_v54 = vmul.f32 %v776_v27, %v1613_v14  ;;  %v773_v55 = vadd.f32 %v1277_v25, %v764_v51 }
 0x4a1   :  { %v784_v58 = vrot.slane %v780_v54, 7  ;;  %v777_v59 = vmax.f32 %v773_v55, 0.0  ;;  %v796_v60 = vrot.slane %v780_v54, 1 }
 0x4a3   :  { %814 = vrot.lane.b32.xlu1 %v780_v54, %s1556_s30  ;;  %v781_v61 = vmul.f32 %v777_v59, %v1624_v20  ;;  %v787_v62 = vsel %vm231_vm5, %v783_v47, %v784_v58  ;;  %v799_v2 = vsel %vm252_vm3, %v795_v44, %v796_v60  ;;  %v1298_v54 = vld [vmem:[%s2025_s2 + $0x128] sm:$0xff]  ;;  %v1300_v59 = vld [vmem:[%s2025_s2 + $0x138] sm:$0xff] }
 0x4a4   :  { %v803_v12 = vsel %vm1650_vm6, %v799_v2, 0.0  ;;  %v792_v28 = vsel %vm1675_vm11, %v787_v62, 0.0 }
 0x4a5   :  { %816 = vrot.lane.b32.xlu0 %v781_v61, %s1556_s30  ;;  %v785_v63 = vrot.slane %v781_v61, 7  ;;  %v797_v1 = vrot.slane %v781_v61, 1 }
 0x4a7   :  { %v798_v3 = vsel %vm252_vm3, %v796_v60, %v797_v1  ;;  %v789_v4 = vsel %vm231_vm5, %v785_v63, %v782_v50  ;;  %v786_v10 = vsel %vm231_vm5, %v784_v58, %v785_v63  ;;  %v801_v16 = vsel %vm252_vm3, %v797_v1, %v794_v48  ;;  %v1299_v58 = vld [vmem:[%s2025_s2 + $0x130] sm:$0xff] }
 0x4a8   :  { %830 = vrot.lane.b32.xlu1 %v798_v3, %s1557_s5  ;;  %v805_v17 = vsel %vm1633_vm4, %v801_v16, 0.0  ;;  %v790_v22 = vsel %vm1666_vm7, %v789_v4, 0.0  ;;  %v1494_v60 = vpack.c.bf16 %v1300_v59, %v1299_v58 }
 0x4a9   :  { %828 = vrot.lane.b32.xlu0 %v803_v12, %s1557_s5 }
 0x4ad   :  { %832 = vrot.lane.b32.xlu0 %v805_v17, %s1557_s5 }
 0x50d   :  { %v813_v18 = vpop.permute.xlu1 %812 }
 0x50e   :  { %v811_v19 = vpop.permute.xlu0 %810  ;;  %v839_v24 = vsel %vm420_vm12, %v788_v53, %v813_v18  ;;  %v1297_v53 = vld [vmem:[%s2025_s2 + $0x120] sm:$0xff] }
 0x50f   :  { %v838_v25 = vsel %vm420_vm12, %v790_v22, %v811_v19  ;;  %v1490_v55 = vpack.c.bf16 %v1298_v54, %v1297_v53 }
 0x511   :  { %v827_v23 = vpop.permute.xlu1 %826  ;;  %1491 = vmatprep.subr.bf16.mxu1 %v1490_v55 }
 0x512   :  { %v842_v39 = vsel %vm571_vm13, %v838_v25, %v827_v23  ;;  %1493 = vmatpush3.bf16.msra.mxu1 %v1490_v55 }
 0x513   :  { %1416 = vmatprep.mubr.msk.f32.mxu0 %vm594_vm14, %v842_v39  ;;  %1495 = vmatprep.subr.bf16.mxu1 %v1494_v60 }
 0x515   :  { %v815_v26 = vpop.permute.xlu1 %814 }
 0x516   :  { %v840_v30 = vsel %vm420_vm12, %v792_v28, %v815_v26  ;;  %1497 = vmatpush3.bf16.msra.mxu1 %v1494_v60 }
 0x517   :  { %v817_v7 = vpop.permute.xlu0 %816 }
 0x518   :  { %v841_v32 = vsel %vm420_vm12, %v786_v10, %v817_v7 }
 0x51a   :  { %v831_v56 = vpop.permute.xlu1 %830 }
 0x51b   :  { %v829_v29 = vpop.permute.xlu0 %828  ;;  %v844_v31 = vsel %vm571_vm13, %v840_v30, %v831_v56 }
 0x51c   :  { %v843_v49 = vsel %vm571_vm13, %v839_v24, %v829_v29 }
 0x51d   :  { %1417 = vmatmul.mubr.msk.f32.vlgmr.msra.gmra.mrb[4].mxu0 %vm594_vm14, %v843_v49 }
 0x51e   :  { %1419 = vmatprep.mubr.msk.f32.mxu0 %vm594_vm14, %v844_v31 }
 0x51f   :  { %v833_v33 = vpop.permute.xlu0 %832 }
 0x520   :  { %v845_v34 = vsel %vm571_vm13, %v841_v32, %v833_v33 }
 0x521   :  { %1420 = vmatmul.mubr.msk.f32.gmra.mrb[6].mxu0 %vm594_vm14, %v845_v34 }
 0x5f0   :  { %v1418_v35 = vpop.f32.mrb[4].mxu0 }
 0x5f1   :  { %v1943_v36 = vadd.f32 %v1418_v35, %v1290_v57  ;;  %v942_v37 = vpop.f32.mrb[5].mxu0 }
 0x5f2   :  { %v1945_v11 = vadd.f32 %v1290_v57, %v942_v37 }
 0x5f3   :  { %v964_v38 = vsel %vm420_vm12, %v1943_v36, 0.0  ;;  %v974_v41 = vmul.f32 %v1943_v36, %v1943_v36 }
 0x5f4   :  { %965 = vadd.xlane.f32.xlu0 %v964_v38  ;;  %v1421_v40 = vpop.f32.mrb[6].mxu0  ;;  %v961_v0 = vsel %vm420_vm12, %v1945_v11, 0.0  ;;  %v973_v13 = vmul.f32 %v1945_v11, %v1945_v11 }
 0x5f5   :  { %962 = vadd.xlane.f32.xlu1 %v961_v0  ;;  %v952_v42 = vpop.f32.mrb[7].mxu0  ;;  %v1958_v45 = vadd.f32 %v1421_v40, %v1290_v57  ;;  %v980_v46 = vsel %vm420_vm12, %v974_v41, 0.0 }
 0x5f6   :  { %v977_v43 = vsel %vm420_vm12, %v973_v13, 0.0  ;;  %v1956_v44 = vadd.f32 %v1290_v57, %v952_v42  ;;  %v1295_v13 = vld [vmem:[%s2026_s3 + $0x5] ss:$0 sm:$0xff] }
 0x5f7   :  { %v970_v50 = vsel %vm420_vm12, %v1958_v45, 0.0  ;;  %v976_v27 = vmul.f32 %v1958_v45, %v1958_v45 }
 0x5f8   :  { %978 = vadd.xlane.f32.xlu0 %v977_v43  ;;  %v967_v47 = vsel %vm420_vm12, %v1956_v44, 0.0  ;;  %v975_v48 = vmul.f32 %v1956_v44, %v1956_v44 }
 0x5f9   :  { %981 = vadd.xlane.f32.xlu1 %v980_v46  ;;  %v986_v52 = vsel %vm420_vm12, %v976_v27, 0.0  ;;  %v1296_v46 = vld [vmem:[%s2026_s3 + $0x8] ss:$0 sm:$0xff] }
 0x5fa   :  { %v983_v51 = vsel %vm420_vm12, %v975_v48, 0.0 }
 0x5fc   :  { %968 = vadd.xlane.f32.xlu0 %v967_v47 }
 0x5fd   :  { %971 = vadd.xlane.f32.xlu1 %v970_v50 }
 0x600   :  { %984 = vadd.xlane.f32.xlu0 %v983_v51 }
 0x601   :  { %987 = vadd.xlane.f32.xlu1 %v986_v52 }
 0x681   :  { %v966_v61 = vpop.xlane.xlu0 %965 }
 0x682   :  { %v963_v62 = vpop.xlane.xlu1 %962  ;;  %v990_v63 = vmul.f32 0.03125, %v966_v61 }
 0x683   :  { %v989_v1 = vmul.f32 0.03125, %v963_v62 }
 0x684   :  { %v998_v12 = vmul.f32 %v990_v63, %v990_v63  ;;  %v1010_v0 = vsub.f32 %v1943_v36, %v990_v63 }
 0x685   :  { %v997_v2 = vmul.f32 %v989_v1, %v989_v1  ;;  %v979_v3 = vpop.xlane.xlu0 %978  ;;  %v1009_v38 = vsub.f32 %v1945_v11, %v989_v1 }
 0x686   :  { %v993_v4 = vmul.f32 0.03125, %v979_v3  ;;  %v982_v10 = vpop.xlane.xlu1 %981 }
 0x687   :  { %v994_v16 = vmul.f32 0.03125, %v982_v10 }
 0x688   :  { %v1001_v17 = vsub.f32 %v993_v4, %v997_v2 }
 0x689   :  { %v1002_v18 = vsub.f32 %v994_v16, %v998_v12  ;;  %v969_v19 = vpop.xlane.xlu0 %968 }
 0x68a   :  { %v1005_v22 = vmax.f32 %v1001_v17, 0.0  ;;  %v991_v25 = vmul.f32 0.03125, %v969_v19  ;;  %v972_v23 = vpop.xlane.xlu1 %971 }
 0x68b   :  { %v1006_v39 = vmax.f32 %v1002_v18, 0.0  ;;  %v992_v26 = vmul.f32 0.03125, %v972_v23 }
 0x68c   :  { %v1013_v7 = vadd.f32 0.0001, %v1005_v22  ;;  %v999_v28 = vmul.f32 %v991_v25, %v991_v25  ;;  %v1011_v11 = vsub.f32 %v1956_v44, %v991_v25 }
 0x68d   :  { %v1014_v56 = vadd.f32 0.0001, %v1006_v39  ;;  %v985_v24 = vpop.xlane.xlu0 %984  ;;  %v1000_v49 = vmul.f32 %v992_v26, %v992_v26  ;;  %v1012_v36 = vsub.f32 %v1958_v45, %v992_v26  ;;  %v1305_v45 = vld [vmem:[%s2026_s3 + $0x9] ss:$0 sm:$0xff]  ;;  %s1558_s3 = smov [#allocation2]  }
 0x68e   :  { %1521 = vrsqrt.f32 %v1013_v7  ;;  %v995_v29 = vmul.f32 0.03125, %v985_v24  ;;  %v988_v30 = vpop.xlane.xlu1 %987  ;;  %s1238_s23 = sshll.u32 %s1558_s3, 4  ;;  %s1239_s23 = int_to_ptr.vmem [resolvable:$true] %s1238_s23 }
 0x68f   :  { %1523 = vrsqrt.f32 %v1014_v56  ;;  %v996_v31 = vmul.f32 0.03125, %v988_v30  ;;  %s1529_s24 = scalar_lea.vmem %s1239_s23, 128  ;;  %p1534_p1 = scmp.lt.s32.totalorder %s1239_s23, %s1239_s23 }
 0x690   :  { %v1003_v32 = vsub.f32 %v995_v29, %v999_v28  ;;  %p1530_p0 = scmp.ne.s32.totalorder %s1239_s23, %s1529_s24  ;;  %p1535_p2 = scmp.lt.s32.totalorder %s1529_s24, %s1529_s24 }
 0x691   :  { %v1004_v33 = vsub.f32 %v996_v31, %v1000_v49 }
 0x692   :  { %v1007_v34 = vmax.f32 %v1003_v32, 0.0  ;;  %p1536_p3 = por %p1535_p2, %p1534_p1 }
 0x693   :  { %v1008_v57 = vmax.f32 %v1004_v33, 0.0 }
 0x694   :  { %v1015_v35 = vadd.f32 0.0001, %v1007_v34  ;;  %p1537_p4 = pnand %p1536_p3, %p1530_p0 }
 0x695   :  { %v1016_v37 = vadd.f32 0.0001, %v1008_v57 }
 0x696   :  { %1525 = vrsqrt.f32 %v1015_v35 }
 0x697   :  { %1527 = vrsqrt.f32 %v1016_v37 }
 0x698   :  { %v1522_v40 = vpop.eup %1521 }
 0x699   :  { %v1524_v41 = vpop.eup %1523  ;;  %v1021_v42 = vmul.f32 %v1522_v40, %v1009_v38 }
 0x69a   :  { %v1022_v43 = vmul.f32 %v1524_v41, %v1010_v0 }
 0x69b   :  { %v1030_v47 = vmul.f32 %v1295_v13, %v1021_v42 }
 0x69c   :  { %v1031_v48 = vmul.f32 %v1295_v13, %v1022_v43 }
 0x69d   :  { %v1039_v50 = vadd.f32 %v1296_v46, %v1030_v47 }
 0x69e   :  { %v1040_v27 = vadd.f32 %v1296_v46, %v1031_v48 }
 0x69f   :  { %v1043_v51 = vmax.f32 %v1039_v50, 0.0 }
 0x6a0   :  { %v1526_v52 = vpop.eup %1525  ;;  %v1044_v53 = vmax.f32 %v1040_v27, 0.0 }
 0x6a1   :  { %v1528_v54 = vpop.eup %1527  ;;  %1430 = vmatprep.mubr.msk.f32.mxu1 %vm420_vm12, %v1043_v51  ;;  %v1023_v55 = vmul.f32 %v1526_v52, %v1011_v11 }
 0x6a2   :  { %1431 = vmatmul.mubr.msk.f32.vlgmr.msra.gmra.mrb[4].mxu1 %vm420_vm12, %v1044_v53  ;;  %v1024_v58 = vmul.f32 %v1528_v54, %v1012_v36 }
 0x6a3   :  { %v1032_v59 = vmul.f32 %v1295_v13, %v1023_v55 }
 0x6a4   :  { %v1033_v60 = vmul.f32 %v1295_v13, %v1024_v58 }
 0x6a5   :  { %v1041_v61 = vadd.f32 %v1296_v46, %v1032_v59 }
 0x6a6   :  { %v1042_v62 = vadd.f32 %v1296_v46, %v1033_v60 }
 0x6a7   :  { %v1045_v63 = vmax.f32 %v1041_v61, 0.0 }
 0x6a8   :  { %v1046_v1 = vmax.f32 %v1042_v62, 0.0 }
 0x6a9   :  { %1433 = vmatprep.mubr.msk.f32.mxu1 %vm420_vm12, %v1045_v63 }
 0x6aa   :  { %1434 = vmatmul.mubr.msk.f32.gmra.mrb[6].mxu1 %vm420_vm12, %v1046_v1 }
 0x775   :  { %v1432_v44 = vpop.f32.mrb[4].mxu1 }
 0x776   :  { %v1131_v2 = vpop.f32.mrb[5].mxu1  ;;  %v1151_v3 = vadd.f32 %v1432_v44, %v1604_v9 }
 0x777   :  { %v1150_v4 = vadd.f32 %v1131_v2, %v1598_v6 }
 0x778   :  { %v1159_v12 = vadd.f32 %v1305_v45, %v1151_v3 }
 0x779   :  { %v1158_v10 = vadd.f32 %v1305_v45, %v1150_v4 }
 0x77a   :  { %v1163_v19 = vmul.f32 %v1159_v12, %v1626_v21 }
 0x77b   :  { %v1162_v16 = vmul.f32 %v1158_v10, %v1615_v15 }
 0x77d   :  { %1166 = vxpose.xlu0.b32.start [1/2] (short) (narrow) %v1162_v16, 8  ;;  %v1435_v17 = vpop.f32.mrb[6].mxu1 }
 0x77e   :  { %v1141_v18 = vpop.f32.mrb[7].mxu1  ;;  %v1153_v22 = vadd.f32 %v1435_v17, %v1602_v8 }
 0x77f   :  { %v1152_v25 = vadd.f32 %v1141_v18, %v1596_v5 }
 0x780   :  { %v1161_v39 = vadd.f32 %v1305_v45, %v1153_v22 }
 0x781   :  { %v1160_v23 = vadd.f32 %v1305_v45, %v1152_v25  ;;  %1167 = vxpose.xlu0.b32.end [2/2] (short) (narrow) %v1163_v19, 8 }
 0x782   :  { %v1165_v6 = vmul.f32 %v1161_v39, %v1624_v20 }
 0x783   :  { %v1164_v9 = vmul.f32 %v1160_v23, %v1613_v14 }
 0x785   :  { %1198 = vxpose.xlu1.b32.start [1/2] (short) (narrow) %v1164_v9, 8 }
 0x789   :  { %1199 = vxpose.xlu1.b32.end [2/2] (short) (narrow) %v1165_v6, 8 }
 0x7fd   :  { %v1182_v15 = vpop.trf.xlu0 }
 0x7fe   :  { %1231 = vst.msk [vmem:[#allocation2] sm:$0xf] %vm1230_vm15, %v1182_v15 }
 0x805   :  { %v1214_v21 = vpop.trf.xlu1 }
 0x806   :  { %1232 = vst.msk [vmem:[#allocation2 + $0x4] sm:$0xf] %vm1230_vm15, %v1214_v21 }
 0x807   :  { %1540 = shalt.err (!%p1537_p4)
}
 0x808   :  { %s1541_s28 = scalar_lea.hbm %s2027_s4, 128 }
 0x809   :  { %p1542_p5 = scmp.ne.s32.totalorder %s2027_s4, %s1541_s28  ;;  %p1545_p6 = scmp.lt.u32.totalorder %s1541_s28, %s2027_s4 }
 0x80b   :  { %p1547_p7 = pnand %p1545_p6, %p1542_p5 }
 0x80d   :  { %1550 = shalt.err (!%p1547_p7)
}
 0x80e   :  { %1244 = dma.vmem_to_hbm [thread:$0]  %s1239_s23, 128, %s2027_s4, [#allocation3], %s1557_s5, %s1557_s5, %s1554_s25  }
 0x80f   :  { %1551 = dma.done.wait [#allocation3], 128  }
 0x810   :  { %1552 = vsyncadd [#allocation3], 4294967168 }
 0x811   :  { %1248 = vsyncpa [#allocation3], 1 }

</bundles_post_ra>
